<compile_context>
chip_gen: v7x
topology: tpu7x:2x2x1
jax: 0.10.0
libtpu: 0.0.40
codegen_flags: <defaults>
</compile_context>

<pallas_src>
import jax
import jax.numpy as jnp
from jax.experimental import pallas as pl
from jax.experimental.pallas import tpu as pltpu


VMEM_SPEC = pl.BlockSpec(memory_space=pltpu.MemorySpace.VMEM)
PARALLEL_1D = pltpu.CompilerParams(dimension_semantics=("parallel",))


# --------------------------------------------------------------------------------------
# Generic row-tiled matmul (bf16 MXU, f32 accumulate)
# --------------------------------------------------------------------------------------
def _matmul_kernel(x_ref, w_ref, o_ref):
    o_ref[...] = jnp.dot(
        x_ref[...].astype(jnp.bfloat16),
        w_ref[...].astype(jnp.bfloat16),
        preferred_element_type=jnp.float32,
    ).astype(o_ref.dtype)


def matmul(x, w, *, block_m=512):
    M, K = x.shape
    K2, N = w.shape
    assert K == K2
    tm = min(M, block_m)
    if tm != M and tm % 8 != 0:
        tm = M
    return pl.pallas_call(
        _matmul_kernel,
        out_shape=jax.ShapeDtypeStruct((M, N), jnp.float32),
        grid=(pl.cdiv(M, tm),),
        in_specs=[
            pl.BlockSpec((tm, K), lambda i: (i, 0)),
            pl.BlockSpec((K, N), lambda i: (0, 0)),   # weight resident across grid
        ],
        out_specs=pl.BlockSpec((tm, N), lambda i: (i, 0)),
        compiler_params=PARALLEL_1D,
    )(x, w)


# --------------------------------------------------------------------------------------
# LayerNorm (row-tiled) and fused (x + pos_emb) -> LayerNorm
# --------------------------------------------------------------------------------------
def _layernorm_kernel(x_ref, w_ref, b_ref, o_ref):
    x = x_ref[...].astype(jnp.float32)
    mean = jnp.mean(x, axis=-1, keepdims=True)
    var = jnp.mean((x - mean) ** 2, axis=-1, keepdims=True)
    y = (x - mean) * jax.lax.rsqrt(var + 1e-5)
    o_ref[...] = (y * w_ref[...] + b_ref[...]).astype(o_ref.dtype)


def layernorm(x2d, w, b, *, block_rows=256):
    M, D = x2d.shape
    tr = min(M, block_rows)
    if tr != M and tr % 8 != 0:
        tr = M
    return pl.pallas_call(
        _layernorm_kernel,
        out_shape=jax.ShapeDtypeStruct((M, D), x2d.dtype),
        grid=(pl.cdiv(M, tr),),
        in_specs=[
            pl.BlockSpec((tr, D), lambda i: (i, 0)),
            pl.BlockSpec((1, D), lambda i: (0, 0)),
            pl.BlockSpec((1, D), lambda i: (0, 0)),
        ],
        out_specs=pl.BlockSpec((tr, D), lambda i: (i, 0)),
        compiler_params=PARALLEL_1D,
    )(x2d, w, b)


def _add_ln_kernel(x_ref, pos_ref, w_ref, b_ref, o_ref):
    x = x_ref[0].astype(jnp.float32) + pos_ref[...].astype(jnp.float32)
    mean = jnp.mean(x, axis=-1, keepdims=True)
    var = jnp.mean((x - mean) ** 2, axis=-1, keepdims=True)
    y = (x - mean) * jax.lax.rsqrt(var + 1e-5)
    o_ref[0] = (y * w_ref[...] + b_ref[...]).astype(o_ref.dtype)


def add_pos_layernorm(x, pos, w, b):
    B, L, E = x.shape
    return pl.pallas_call(
        _add_ln_kernel,
        out_shape=jax.ShapeDtypeStruct((B, L, E), x.dtype),
        grid=(B,),
        in_specs=[
            pl.BlockSpec((1, L, E), lambda n: (n, 0, 0)),
            pl.BlockSpec((L, E), lambda n: (0, 0)),
            pl.BlockSpec((1, E), lambda n: (0, 0)),
            pl.BlockSpec((1, E), lambda n: (0, 0)),
        ],
        out_specs=pl.BlockSpec((1, L, E), lambda n: (n, 0, 0)),
        compiler_params=PARALLEL_1D,
    )(x, pos, w, b)


# --------------------------------------------------------------------------------------
# Fused residual attention block (one grid step per batch element)
# --------------------------------------------------------------------------------------
def _make_resblock_kernel(num_heads, has_mask):
    def kernel(*args):
        if has_mask:
            (x_ref, mask_ref, ln1_w, ln1_b, wqkv, bqkv, wo, bo,
             ln2_w, ln2_b, wfc, bfc, wpr, bpr, o_ref) = args
        else:
            (x_ref, ln1_w, ln1_b, wqkv, bqkv, wo, bo,
             ln2_w, ln2_b, wfc, bfc, wpr, bpr, o_ref) = args
            mask_ref = None

        x = x_ref[0].astype(jnp.float32)          # (L, E)
        L, E = x.shape
        hd = E // num_heads
        scale = float(hd) ** -0.5

        def ln(v, w_, b_):
            m = jnp.mean(v, axis=-1, keepdims=True)
            var = jnp.mean((v - m) ** 2, axis=-1, keepdims=True)
            return (v - m) * jax.lax.rsqrt(var + 1e-5) * w_[...] + b_[...]

        def mm(a, b):                              # bf16 MXU matmul, f32 accumulate
            return jnp.dot(a.astype(jnp.bfloat16), b.astype(jnp.bfloat16),
                           preferred_element_type=jnp.float32)

        # ---- attention branch ----
        h = ln(x, ln1_w, ln1_b)
        qkv = mm(h, wqkv[...]) + bqkv[...]         # (L, 3E), one fused projection
        q = qkv[:, :E] * scale
        k = qkv[:, E:2 * E]
        v = qkv[:, 2 * E:]

        heads = []
        for hh in range(num_heads):
            sl = slice(hh * hd, (hh + 1) * hd)
            qh = q[:, sl].astype(jnp.bfloat16)
            kh = k[:, sl].astype(jnp.bfloat16)
            vh = v[:, sl].astype(jnp.bfloat16)
            s = jax.lax.dot_general(
                qh, kh, (((1,), (1,)), ((), ())),
                preferred_element_type=jnp.float32)            # (L, L)
            if has_mask:
                s = s + mask_ref[...]
            s = s - jnp.max(s, axis=-1, keepdims=True)
            p = jnp.exp(s)
            p = p * pl.reciprocal(jnp.sum(p, axis=-1, keepdims=True), approx=True)
            heads.append(jnp.dot(p.astype(jnp.bfloat16), vh,
                                 preferred_element_type=jnp.float32))
        attn = heads[0] if num_heads == 1 else jnp.concatenate(heads, axis=-1)
        x = x + mm(attn, wo[...]) + bo[...]

        # ---- MLP branch ----
        h = ln(x, ln2_w, ln2_b)
        f = mm(h, wfc[...]) + bfc[...]
        f = f * jax.nn.sigmoid(1.702 * f)          # QuickGELU
        x = x + mm(f, wpr[...]) + bpr[...]

        o_ref[0] = x.astype(o_ref.dtype)

    return kernel


def resblock(x, mask, p, num_heads):
    N, L, E = x.shape
    has_mask = mask is not None
    kernel = _make_resblock_kernel(num_heads, has_mask)

    def full_spec(a):
        return pl.BlockSpec(a.shape, lambda n, _nd=a.ndim: (0,) * _nd)

    x_spec = pl.BlockSpec((1, L, E), lambda n: (n, 0, 0))
    weights = [p["ln1_w"], p["ln1_b"], p["wqkv"], p["bqkv"], p["wo"], p["bo"],
               p["ln2_w"], p["ln2_b"], p["wfc"], p["bfc"], p["wpr"], p["bpr"]]

    args = [x]
    in_specs = [x_spec]
    if has_mask:
        args.append(mask)
        in_specs.append(pl.BlockSpec(mask.shape, lambda n: (0, 0)))
    args += weights
    in_specs += [full_spec(w) for w in weights]

    return pl.pallas_call(
        kernel,
        out_shape=jax.ShapeDtypeStruct((N, L, E), x.dtype),
        grid=(N,),
        in_specs=in_specs,
        out_specs=x_spec,
        compiler_params=PARALLEL_1D,
    )(*args)


# --------------------------------------------------------------------------------------
# Final CLIP logits (normalize + one scaled similarity matmul; transpose in wrapper)
# --------------------------------------------------------------------------------------
def _clip_logits_kernel(img_ref, txt_ref, scale_ref, li_ref):
    img = img_ref[...].astype(jnp.float32)
    txt = txt_ref[...].astype(jnp.float32)
    img = img * jax.lax.rsqrt(jnp.sum(img * img, axis=-1, keepdims=True))
    txt = txt * jax.lax.rsqrt(jnp.sum(txt * txt, axis=-1, keepdims=True))
    s = jnp.exp(scale_ref[...])                    # (1, 1), broadcasts
    li = jax.lax.dot_general(
        img, txt, (((1,), (1,)), ((), ())), preferred_element_type=jnp.float32)
    li_ref[...] = (s * li).astype(li_ref.dtype)


def clip_logits(img_feat, txt_feat, logit_scale):
    b_i = img_feat.shape[0]
    b_t = txt_feat.shape[0]
    li = pl.pallas_call(
        _clip_logits_kernel,
        out_shape=jax.ShapeDtypeStruct((b_i, b_t), jnp.float32),
        in_specs=[VMEM_SPEC, VMEM_SPEC, VMEM_SPEC],
        out_specs=VMEM_SPEC,
    )(img_feat, txt_feat, logit_scale)
    return li, li.T                                # logits_per_text == logits_per_image.T


# --------------------------------------------------------------------------------------
# Parameter initialization (deterministic, matching module shapes; matmul weights bf16)
# --------------------------------------------------------------------------------------
def init_resblock_params(key, width, layers):
    attn_std = width ** -0.5
    proj_std = (width ** -0.5) * ((2 * layers) ** -0.5)
    fc_std = (2 * width) ** -0.5
    ks = jax.random.split(key, 6)
    f32, bf16 = jnp.float32, jnp.bfloat16
    wq = jax.random.normal(ks[0], (width, width), f32) * attn_std
    wk = jax.random.normal(ks[1], (width, width), f32) * attn_std
    wv = jax.random.normal(ks[2], (width, width), f32) * attn_std
    return dict(
        ln1_w=jnp.ones((1, width), f32),
        ln1_b=jnp.zeros((1, width), f32),
        wqkv=jnp.concatenate([wq, wk, wv], axis=1).astype(bf16),
        bqkv=jnp.zeros((1, 3 * width), f32),
        wo=(jax.random.normal(ks[3], (width, width), f32) * proj_std).astype(bf16),
        bo=jnp.zeros((1, width), f32),
        ln2_w=jnp.ones((1, width), f32),
        ln2_b=jnp.zeros((1, width), f32),
        wfc=(jax.random.normal(ks[4], (width, 4 * width), f32) * fc_std).astype(bf16),
        bfc=jnp.zeros((1, 4 * width), f32),
        wpr=(jax.random.normal(ks[5], (4 * width, width), f32) * proj_std).astype(bf16),
        bpr=jnp.zeros((1, width), f32),
    )


def init_clip_params(
    key, *, embed_dim, image_resolution, vision_layers, vision_width,
    vision_patch_size, context_length, vocab_size, transformer_width,
    transformer_layers,
):
    f32, bf16 = jnp.float32, jnp.bfloat16
    keys = jax.random.split(key, 8 + vision_layers + transformer_layers)
    ki = iter(keys)
    num_patches = (image_resolution // vision_patch_size) ** 2
    vis_scale = vision_width ** -0.5

    conv1 = jax.random.normal(
        next(ki), (vision_width, 3, vision_patch_size, vision_patch_size), f32) * 0.02
    params = dict(
        conv1_w=conv1.reshape(vision_width, -1).T.astype(bf16),   # (C*ps*ps, width)
        class_embedding=jax.random.normal(next(ki), (vision_width,), f32) * vis_scale,
        vis_pos_emb=jax.random.normal(
            next(ki), (num_patches + 1, vision_width), f32) * vis_scale,
        ln_pre_w=jnp.ones((1, vision_width), f32),
        ln_pre_b=jnp.zeros((1, vision_width), f32),
        ln_post_w=jnp.ones((1, vision_width), f32),
        ln_post_b=jnp.zeros((1, vision_width), f32),
        vis_proj=(jax.random.normal(next(ki), (vision_width, embed_dim), f32)
                  * vis_scale).astype(bf16),
        token_embedding=jax.random.normal(
            next(ki), (vocab_size, transformer_width), f32) * 0.02,
        txt_pos_emb=jax.random.normal(
            next(ki), (context_length, transformer_width), f32) * 0.01,
        ln_final_w=jnp.ones((1, transformer_width), f32),
        ln_final_b=jnp.zeros((1, transformer_width), f32),
        text_projection=(jax.random.normal(next(ki), (transformer_width, embed_dim), f32)
                         * (transformer_width ** -0.5)).astype(bf16),
        logit_scale=jnp.full((1, 1), jnp.log(1.0 / 0.07), f32),
    )
    params["vis_blocks"] = [
        init_resblock_params(next(ki), vision_width, vision_layers)
        for _ in range(vision_layers)
    ]
    params["txt_blocks"] = [
        init_resblock_params(next(ki), transformer_width, transformer_layers)
        for _ in range(transformer_layers)
    ]
    return params


# --------------------------------------------------------------------------------------
# Forward pass
# --------------------------------------------------------------------------------------
def encode_image(params, image, *, patch_size, vision_width, vision_heads):
    B, C, H, W = image.shape
    gh, gw = H // patch_size, W // patch_size

    # patch extraction (glue) + row-tiled Pallas matmul (== conv with kernel=stride=patch)
    patches = image.reshape(B, C, gh, patch_size, gw, patch_size)
    patches = patches.transpose(0, 2, 4, 1, 3, 5)           # (B, gh, gw, C, ps, ps)
    patches = patches.reshape(B * gh * gw, C * patch_size * patch_size)
    x = matmul(patches, params["conv1_w"])                  # (B*P, width)
    x = x.reshape(B, gh * gw, vision_width)

    cls = jnp.broadcast_to(
        params["class_embedding"][None, None, :], (B, 1, vision_width)).astype(x.dtype)
    x = jnp.concatenate([cls, x], axis=1)                   # (B, P+1, width)

    # fused (+ positional embedding) -> ln_pre
    x = add_pos_layernorm(x, params["vis_pos_emb"], params["ln_pre_w"], params["ln_pre_b"])

    # transformer, batch-major (N, L, E); no mask for the vision tower
    for p in params["vis_blocks"]:
        x = resblock(x, None, p, vision_heads)

    x0 = x[:, 0, :]                                         # (B, width)
    x0 = layernorm(x0, params["ln_post_w"], params["ln_post_b"])
    return matmul(x0, params["vis_proj"])                   # (B, embed_dim)


def encode_text(params, text, *, transformer_width, transformer_heads):
    B, n_ctx = text.shape
    x = params["token_embedding"][text]                     # (B, n_ctx, tw) gather (glue)
    x = x + params["txt_pos_emb"][:n_ctx][None, :, :]

    row = jnp.arange(n_ctx)
    mask = jnp.where(row[None, :] > row[:, None], -jnp.inf, 0.0).astype(jnp.float32)
    for p in params["txt_blocks"]:
        x = resblock(x, mask, p, transformer_heads)

    x = layernorm(x.reshape(B * n_ctx, transformer_width),
                  params["ln_final_w"], params["ln_final_b"]
                  ).reshape(B, n_ctx, transformer_width)

    eot = x[jnp.arange(B), jnp.argmax(text, axis=-1)]       # (B, tw) index select (glue)
    return matmul(eot, params["text_projection"])           # (B, embed_dim)


def clip_forward(params, image, text, cfg):
    image_features = encode_image(
        params, image,
        patch_size=cfg["vision_patch_size"],
        vision_width=cfg["vision_width"],
        vision_heads=cfg["vision_width"] // 64,
    )
    text_features = encode_text(
        params, text,
        transformer_width=cfg["transformer_width"],
        transformer_heads=cfg["transformer_heads"],
    )
    return clip_logits(image_features, text_features, params["logit_scale"])


# --------------------------------------------------------------------------------------
if __name__ == "__main__":
    cfg = dict(
        embed_dim=32,
        image_resolution=16,
        vision_layers=2,
        vision_width=64,          # vision_heads = 64 // 64 = 1
        vision_patch_size=8,      # (16/8)^2 + 1 = 5 tokens
        context_length=8,
        vocab_size=50,
        transformer_width=32,
        transformer_heads=2,
        transformer_layers=2,
    )

    key = jax.random.PRNGKey(0)
    kp, ki, kt = jax.random.split(key, 3)
    params = init_clip_params(
        kp,
        embed_dim=cfg["embed_dim"],
        image_resolution=cfg["image_resolution"],
        vision_layers=cfg["vision_layers"],
        vision_width=cfg["vision_width"],
        vision_patch_size=cfg["vision_patch_size"],
        context_length=cfg["context_length"],
        vocab_size=cfg["vocab_size"],
        transformer_width=cfg["transformer_width"],
        transformer_layers=cfg["transformer_layers"],
    )

    image = jax.random.normal(ki, (2, 3, 16, 16), jnp.float32)   # NCHW
    text = jax.random.randint(kt, (2, 8), 0, cfg["vocab_size"], jnp.int32)

    logits_per_image, logits_per_text = clip_forward(params, image, text, cfg)
    jax.block_until_ready((logits_per_image, logits_per_text))
    assert logits_per_image.shape == (2, 2) and logits_per_text.shape == (2, 2)
    assert bool(jnp.all(jnp.isfinite(logits_per_image)))
    assert bool(jnp.all(jnp.isfinite(logits_per_text)))
    print("KERNEL_OK")
</pallas_src>

<mosaic_0001>
module attributes {stable_mosaic.version = 11 : i64} {
  func.func @_matmul_kernel(%arg0: i32, %arg1: memref<8x192xf32, #tpu.memory_space<vmem>>, %arg2: memref<192x64xbf16, #tpu.memory_space<vmem>>, %arg3: memref<8x64xf32, #tpu.memory_space<vmem>>) attributes {dimension_semantics = [#tpu.dimension_semantics<parallel>], iteration_bounds = array<i64: 1>, scalar_prefetch = 0 : i64, scratch_operands = 0 : i64, tpu.core_type = #tpu.core_type<tc>, window_params = [{transform_indices = @transform_0, window_bounds = array<i64: 8, 192>}, {pipeline_mode = #tpu.pipeline_mode<synchronous>, transform_indices = @transform_1, window_bounds = array<i64: 192, 64>}, {transform_indices = @transform_2, window_bounds = array<i64: 8, 64>}]} {
    %c0 = arith.constant 0 : index
    %c0_0 = arith.constant 0 : index
    %0 = vector.load %arg1[%c0, %c0_0] : memref<8x192xf32, #tpu.memory_space<vmem>>, vector<8x192xf32>
    %1 = arith.truncf %0 : vector<8x192xf32> to vector<8x192xbf16>
    %c0_1 = arith.constant 0 : index
    %c0_2 = arith.constant 0 : index
    %2 = vector.load %arg2[%c0_1, %c0_2] : memref<192x64xbf16, #tpu.memory_space<vmem>>, vector<192x64xbf16>
    %cst = arith.constant dense<0.000000e+00> : vector<8x64xf32>
    %3 = tpu.matmul %1, %2, %cst {dimension_numbers = #tpu.dot_dimension_numbers<[1], [0], [0], [1], [0, 0, 1, 1], [], []>} : vector<8x192xbf16>, vector<192x64xbf16>, vector<8x64xf32> -> vector<8x64xf32>
    %c0_3 = arith.constant 0 : index
    %c0_4 = arith.constant 0 : index
    %4 = vector.load %arg3[%c0_3, %c0_4] : memref<8x64xf32, #tpu.memory_space<vmem>>, vector<8x64xf32>
    tpu.vector_store %arg3[%c0_3, %c0_4], %3 {strides = array<i32>} : memref<8x64xf32, #tpu.memory_space<vmem>>, vector<8x64xf32>,
    return
  }
  func.func @transform_0(%arg0: i32) -> (i32, i32) {
    %c0_i32 = arith.constant 0 : i32
    %c0_i32_0 = arith.constant 0 : i32
    return %arg0, %c0_i32 : i32, i32
  }
  func.func @transform_1(%arg0: i32) -> (i32, i32) {
    %c0_i32 = arith.constant 0 : i32
    %c0_i32_0 = arith.constant 0 : i32
    %c0_i32_1 = arith.constant 0 : i32
    return %c0_i32, %c0_i32_0 : i32, i32
  }
  func.func @transform_2(%arg0: i32) -> (i32, i32) {
    %c0_i32 = arith.constant 0 : i32
    %c0_i32_0 = arith.constant 0 : i32
    return %arg0, %c0_i32 : i32, i32
  }
}

</mosaic_0001>

<bundles_post_ra>
// kernel: tpu_custom_call.1
= control target key start
LH: loop header
LB: loop body
LE: loop exit
PB: predicated region body
PF: predicated region fallthrough
CT: control target
= control target key end

     0   :  { %v223_v1 = vmov 0   ;;  %vm113_vm0 = vcmask 523264   ;;  %s296_s0 = inlined_call_operand.vmem [shape: f32[8,192], index: 0, kind: input, shape index: {}]   ;;  %s297_s1 = inlined_call_operand.vmem [shape: bf16[192,64], index: 1, kind: input, shape index: {}]   ;;  %s298_s2 = inlined_call_operand.hbm [shape: f32[8,64], index: 2, kind: output, shape index: {}]  }
   0x1   :  { %v187_v0 = vld [vmem:[%s297_s1] sm:$0xff]   ;;  %117 = vmatprep.subr.bf16.mxu0 %v223_v1  ;;  %v188_v2 = vld [vmem:[%s297_s1 + $0x8] sm:$0xff]   ;;  %v189_v3 = vld [vmem:[%s297_s1 + $0x10] sm:$0xff]  }
   0x2   :  { %118 = vmatpush1.bf16.msra.mxu0 %v187_v0  ;;  %v190_v4 = vld [vmem:[%s297_s1 + $0x18] sm:$0xff]   ;;  %v14_v5 = vld [vmem:[%s296_s0 + $0x8] sm:$0xff] }
   0x3   :  { %119 = vmatprep.subr.bf16.mxu0 %v223_v1 }
   0x6   :  { %120 = vmatpush1.bf16.msra.mxu0 %v188_v2 }
   0x7   :  { %121 = vmatprep.subr.bf16.mxu0 %v223_v1 }
   0xa   :  { %122 = vmatpush1.bf16.msra.mxu0 %v189_v3 }
   0xb   :  { %123 = vmatprep.subr.bf16.mxu0 %v223_v1 }
   0xc   :  { %7 = vsyncpa [#allocation3], 0  ;;  %v16_v6 = vpack.c.bf16 %v14_v5, %v14_v5  ;;  %v191_v7 = vld [vmem:[%s297_s1 + $0x20] sm:$0xff]   ;;  %v192_v8 = vld [vmem:[%s297_s1 + $0x28] sm:$0xff]   ;;  %s224_s9 = smov [#allocation2]  }
   0xd   :  { %v193_v9 = vld [vmem:[%s297_s1 + $0x30] sm:$0xff]   ;;  %v194_v10 = vld [vmem:[%s297_s1 + $0x38] sm:$0xff]   ;;  %v195_v11 = vld [vmem:[%s297_s1 + $0x40] sm:$0xff]   ;;  %s164_s10 = sshll.u32 %s224_s9, 4  ;;  %s165_s10 = int_to_ptr.vmem [resolvable:$true] %s164_s10 }
   0xe   :  { %124 = vmatpush1.bf16.msra.mxu0 %v190_v4  ;;  %184 = vmatprep.mubr.msk.bf16.mxu0 %vm113_vm0, %v16_v6  ;;  %v196_v12 = vld [vmem:[%s297_s1 + $0x48] sm:$0xff]   ;;  %v197_v13 = vld [vmem:[%s297_s1 + $0x50] sm:$0xff]   ;;  %v198_v14 = vld [vmem:[%s297_s1 + $0x58] sm:$0xff]   ;;  %s199_s11 = scalar_lea.vmem %s165_s10, 128  ;;  %p204_p1 = scmp.lt.s32.totalorder %s165_s10, %s165_s10 }
   0xf   :  { %125 = vmatprep.subr.bf16.mxu0 %v223_v1  ;;  %v13_v15 = vld [vmem:[%s296_s0] sm:$0xff]  ;;  %p200_p0 = scmp.ne.s32.totalorder %s165_s10, %s199_s11  ;;  %p205_p2 = scmp.lt.s32.totalorder %s199_s11, %s199_s11 }
  0x10   :  { %v15_v16 = vpack.c.bf16 %v13_v15, %v13_v15 }
  0x11   :  { %p206_p3 = por %p205_p2, %p204_p1 }
  0x12   :  { %126 = vmatpush1.bf16.msra.mxu0 %v191_v7 }
  0x13   :  { %127 = vmatprep.subr.bf16.mxu0 %v223_v1  ;;  %p207_p4 = pnand %p206_p3, %p200_p0 }
  0x16   :  { %128 = vmatpush1.bf16.msra.mxu0 %v192_v8 }
  0x17   :  { %129 = vmatprep.subr.bf16.mxu0 %v223_v1 }
  0x1a   :  { %130 = vmatpush1.bf16.msra.mxu0 %v193_v9 }
  0x1b   :  { %131 = vmatprep.subr.bf16.mxu0 %v223_v1 }
  0x1e   :  { %132 = vmatpush1.bf16.msra.mxu0 %v194_v10 }
  0x1f   :  { %133 = vmatprep.subr.bf16.mxu0 %v223_v1 }
  0x22   :  { %134 = vmatpush1.bf16.msra.mxu0 %v195_v11 }
  0x23   :  { %135 = vmatprep.subr.bf16.mxu0 %v223_v1 }
  0x26   :  { %136 = vmatpush1.bf16.msra.mxu0 %v196_v12 }
  0x27   :  { %137 = vmatprep.subr.bf16.mxu0 %v223_v1 }
  0x2a   :  { %138 = vmatpush1.bf16.msra.mxu0 %v197_v13 }
  0x2b   :  { %139 = vmatprep.subr.bf16.mxu0 %v223_v1 }
  0x2e   :  { %140 = vmatpush1.bf16.msra.mxu0 %v198_v14 }
  0x31   :  { %150 = vmatmul.mubr.bf16.vlgmr.msra.gmra.mrb[0].mxu0 %v15_v16 }
 0x104   :  { %v151_v17 = vpop.f32.mrb[0].mxu0 }
 0x105   :  { %157 = vst.msk [vmem:[#allocation2] sm:$0xff] %vm113_vm0, %v151_v17  ;;  %v153_v18 = vpop.f32.mrb[1].mxu0 }
 0x106   :  { %v154_v19 = vpop.f32.mrb[2].mxu0 }
 0x107   :  { %210 = shalt.err (!%p207_p4)
}
 0x108   :  { %s211_s12 = scalar_lea.hbm %s298_s2, 128 }
 0x109   :  { %p212_p5 = scmp.ne.s32.totalorder %s298_s2, %s211_s12  ;;  %p215_p6 = scmp.lt.u32.totalorder %s211_s12, %s298_s2 }
 0x10b   :  { %p217_p7 = pnand %p215_p6, %p212_p5 }
 0x10d   :  { %220 = shalt.err (!%p217_p7)
}
 0x10e   :  { %167 = dma.vmem_to_hbm [thread:$0]  %s165_s10, 128, %s298_s2, [#allocation3]   ;;  %v155_v20 = vpop.f32.mrb[3].mxu0 }
 0x10f   :  { %221 = dma.done.wait [#allocation3], 128  }
 0x110   :  { %222 = vsyncadd [#allocation3], 4294967168 }
 0x111   :  { %171 = vsyncpa [#allocation3], 1 }

</bundles_post_ra>
